<compile_context>
chip_gen: v7x
topology: tpu7x:2x2x1
jax: 0.10.0
libtpu: 0.0.40
codegen_flags: <defaults>
</compile_context>

<pallas_src>
import functools

import jax
import jax.numpy as jnp
from jax.experimental import pallas as pl
from jax.experimental.pallas import tpu as pltpu


def _embed_kernel(patch_ref, w_ref, pos_ref, out_ref):
    # patch_ref: (tm, tk) bf16 ; w_ref: (tk, tn) bf16 ; pos_ref: (tm, tn) f32 ; out_ref: (tm, tn) f32
    k = pl.program_id(3)
    prod = jnp.dot(patch_ref[...], w_ref[...], preferred_element_type=jnp.float32)

    @pl.when(k == 0)
    def _():
        out_ref[...] = pos_ref[...] + prod

    @pl.when(k > 0)
    def _():
        out_ref[...] += prod


def _round_up(v, m):
    return (v + m - 1) // m * m


@functools.partial(jax.jit, static_argnames=("patch_size",))
def embeddings3d_forward(x, conv_weight, pos_enc, patch_size):
    """x: (B, C, D, H, W) f32; conv_weight: (E, C, p, p, p); pos_enc: (1, n_patches, E)."""
    B, C, D, H, W = x.shape
    E = conv_weight.shape[0]
    p = patch_size
    nd, nh, nw = D // p, H // p, W // p
    n_patches = nd * nh * nw
    K = C * p * p * p

    # ---- VMEM budget (generation aware: ~70% of the physical per-core VMEM) ----
    try:
        phys_vmem = int(pltpu.get_tpu_info().vmem_capacity_bytes)
    except Exception:
        phys_vmem = 64 * 1024 * 1024          # conservative fallback: v7x per-TensorCore VMEM
    budget = int(phys_vmem * 0.7)

    # ---- tiling (MXU / vreg aligned, footprint bounded by `budget`) ----
    E_pad = _round_up(E, 128)
    tn = E_pad if E_pad <= 512 else 512       # E gets its own grid axis when large
    E_pad = _round_up(E_pad, tn)

    tm = min(512, _round_up(n_patches, 16))   # multiple of 16 for bf16 sublane packing
    while tm > 16 and _round_up(n_patches, tm) - n_patches >= tm // 2:
        tm //= 2                              # avoid excessive zero-row padding
    n_patches_pad = _round_up(n_patches, tm)  # tm divides n_patches_pad -> no batch straddling

    K_min = _round_up(K, 128)

    def footprint(tk):
        return (2 * tm * tk * 2               # patches tile (bf16), double buffered
                + 2 * tk * tn * 2             # weight tile (bf16), double buffered
                + 2 * tm * tn * 4             # pos tile (f32), double buffered
                + 2 * tm * tn * 4)            # out tile (f32), double buffered

    if footprint(K_min) <= budget:
        tk = K_min                            # single reduction step -> W fetched once total
    else:
        tk = 512
        while tk > 128 and footprint(tk) > budget:
            tk //= 2
    K_pad = _round_up(K, tk)                  # pad K to a multiple of tk (no skinny fallback)

    # ---- glue (fused under jit: cast + transpose + pad become one XLA copy, bf16 output) ----
    patches = x.astype(jnp.bfloat16).reshape(B, C, nd, p, nh, p, nw, p)
    patches = patches.transpose(0, 2, 4, 6, 1, 3, 5, 7).reshape(B, n_patches, K)
    patches = jnp.pad(patches, ((0, 0), (0, n_patches_pad - n_patches), (0, K_pad - K)))

    # conv weight (E, C, p, p, p) -> (K, E); inner (c, kd, kh, kw) order matches patches.
    w_flat = conv_weight.astype(jnp.bfloat16).reshape(E, K).T
    w_flat = jnp.pad(w_flat, ((0, K_pad - K), (0, E_pad - E)))

    # Positional encoding: single (n_patches_pad, E_pad) array, NOT tiled over batch.
    pos = pos_enc.reshape(n_patches, E).astype(jnp.float32)
    pos = jnp.pad(pos, ((0, n_patches_pad - n_patches), (0, E_pad - E)))

    grid = (B, n_patches_pad // tm, E_pad // tn, K_pad // tk)
    n_b, n_i, n_e, n_k = grid

    vmem_limit = int(min(max(footprint(tk) + (4 << 20), 16 << 20), budget))

    # Weight stream count for the cost estimate (constant block index -> fetched once).
    w_streams = 1 if (n_k == 1 and n_e == 1) else n_b * n_i * n_e * n_k

    out = pl.pallas_call(
        _embed_kernel,
        out_shape=jax.ShapeDtypeStruct((B, n_patches_pad, E_pad), jnp.float32),
        grid_spec=pl.GridSpec(
            grid=grid,
            in_specs=[
                pl.BlockSpec((None, tm, tk), lambda b, i, e, k: (b, i, k)),   # patches
                pl.BlockSpec((tk, tn), lambda b, i, e, k: (k, e)),            # weight
                pl.BlockSpec((tm, tn), lambda b, i, e, k: (i, e)),            # pos (no batch dep)
            ],
            out_specs=pl.BlockSpec((None, tm, tn), lambda b, i, e, k: (b, i, e)),
        ),
        compiler_params=pltpu.CompilerParams(
            dimension_semantics=("parallel", "parallel", "parallel", "arbitrary"),
            vmem_limit_bytes=vmem_limit,
        ),
        cost_estimate=pl.CostEstimate(
            flops=2 * B * n_patches_pad * K_pad * E_pad,
            transcendentals=0,
            bytes_accessed=(patches.size * 2
                            + w_flat.size * 2 * w_streams
                            + pos.size * 4 * n_b
                            + B * n_patches_pad * E_pad * 4),
        ),
    )(patches, w_flat, pos)

    # Eval-mode dropout = identity.
    return out[:, :n_patches, :E]


def reference_forward(x, conv_weight, pos_enc, patch_size):
    """Pure-JAX reference using lax.conv_general_dilated (matches PyTorch Conv3d, no bias)."""
    p = patch_size
    y = jax.lax.conv_general_dilated(
        x, conv_weight,
        window_strides=(p, p, p), padding="VALID",
        dimension_numbers=("NCDHW", "OIDHW", "NCDHW"),
        precision=jax.lax.Precision.HIGHEST,
    )  # (B, E, nd, nh, nw)
    B, E, nd, nh, nw = y.shape
    y = y.transpose(0, 2, 3, 4, 1).reshape(B, nd * nh * nw, E)
    return y + pos_enc  # broadcast over batch (eval-mode dropout = identity)


if __name__ == "__main__":
    # Small shapes consistent with the module.
    batch = 2
    input_dim = 4      # C
    embed_dim = 32     # E
    cube_size = (8, 8, 8)
    patch_size = 4
    n_patches = (cube_size[0] * cube_size[1] * cube_size[2]) // (patch_size ** 3)  # 8

    key = jax.random.PRNGKey(0)
    kx, kw, kp = jax.random.split(key, 3)

    x = jax.random.normal(kx, (batch, input_dim) + cube_size, dtype=jnp.float32)
    conv_weight = jax.random.normal(
        kw, (embed_dim, input_dim, patch_size, patch_size, patch_size), dtype=jnp.float32
    ) * 0.02
    pos_enc = jax.random.normal(kp, (1, n_patches, embed_dim), dtype=jnp.float32)

    out = embeddings3d_forward(x, conv_weight, pos_enc, patch_size)
    out = jax.block_until_ready(out)

    # Reference computed on the same bf16-rounded inputs (kernel feeds the MXU bf16, f32 accum).
    x_r = x.astype(jnp.bfloat16).astype(jnp.float32)
    w_r = conv_weight.astype(jnp.bfloat16).astype(jnp.float32)
    ref = reference_forward(x_r, w_r, pos_enc, patch_size)

    assert out.shape == (batch, n_patches, embed_dim)
    err = float(jnp.max(jnp.abs(out - ref)))
    assert jnp.allclose(out, ref, atol=1e-3, rtol=1e-3), err

    print("KERNEL_OK")
</pallas_src>

<mosaic_0001>
module attributes {stable_mosaic.version = 11 : i64} {
  func.func @_embed_kernel(%arg0: i32, %arg1: i32, %arg2: i32, %arg3: i32, %arg4: memref<1x16x256xbf16, #tpu.memory_space<vmem>>, %arg5: memref<256x128xbf16, #tpu.memory_space<vmem>>, %arg6: memref<16x128xf32, #tpu.memory_space<vmem>>, %arg7: memref<1x16x128xf32, #tpu.memory_space<vmem>>) attributes {dimension_semantics = [#tpu.dimension_semantics<parallel>, #tpu.dimension_semantics<parallel>, #tpu.dimension_semantics<parallel>, #tpu.dimension_semantics<arbitrary>], iteration_bounds = array<i64: 2, 1, 1, 1>, scalar_prefetch = 0 : i64, scratch_operands = 0 : i64, tpu.core_type = #tpu.core_type<tc>, window_params = [{transform_indices = @transform_0, window_bounds = array<i64: 1, 16, 256>}, {transform_indices = @transform_1, window_bounds = array<i64: 256, 128>}, {transform_indices = @transform_2, window_bounds = array<i64: 16, 128>}, {transform_indices = @transform_3, window_bounds = array<i64: 1, 16, 128>}]} {
    %c0 = arith.constant 0 : index
    %c0_0 = arith.constant 0 : index
    %c0_1 = arith.constant 0 : index
    %0 = vector.load %arg4[%c0, %c0_0, %c0_1] : memref<1x16x256xbf16, #tpu.memory_space<vmem>>, vector<1x16x256xbf16>
    %1 = vector.shape_cast %0 : vector<1x16x256xbf16> to vector<16x256xbf16>
    %c0_2 = arith.constant 0 : index
    %c0_3 = arith.constant 0 : index
    %2 = vector.load %arg5[%c0_2, %c0_3] : memref<256x128xbf16, #tpu.memory_space<vmem>>, vector<256x128xbf16>
    %cst = arith.constant dense<0.000000e+00> : vector<16x128xf32>
    %3 = tpu.matmul %1, %2, %cst {dimension_numbers = #tpu.dot_dimension_numbers<[1], [0], [0], [1], [0, 0, 1, 1], [], []>} : vector<16x256xbf16>, vector<256x128xbf16>, vector<16x128xf32> -> vector<16x128xf32>
    %c0_i32 = arith.constant 0 : i32
    %4 = arith.cmpi eq, %arg3, %c0_i32 : i32
    %5 = arith.extui %4 : i1 to i32
    %c0_i32_4 = arith.constant 0 : i32
    %6 = arith.cmpi ne, %5, %c0_i32_4 : i32
    scf.if %6 {
      %c0_7 = arith.constant 0 : index
      %c0_8 = arith.constant 0 : index
      %10 = vector.load %arg6[%c0_7, %c0_8] : memref<16x128xf32, #tpu.memory_space<vmem>>, vector<16x128xf32>
      %11 = arith.addf %10, %3 : vector<16x128xf32>
      %c0_9 = arith.constant 0 : index
      %c0_10 = arith.constant 0 : index
      %c0_11 = arith.constant 0 : index
      %12 = vector.load %arg7[%c0_9, %c0_10, %c0_11] : memref<1x16x128xf32, #tpu.memory_space<vmem>>, vector<1x16x128xf32>
      %13 = vector.shape_cast %12 : vector<1x16x128xf32> to vector<16x128xf32>
      %14 = vector.shape_cast %11 : vector<16x128xf32> to vector<1x16x128xf32>
      tpu.vector_store %arg7[%c0_9, %c0_10, %c0_11], %14 {strides = array<i32>} : memref<1x16x128xf32, #tpu.memory_space<vmem>>, vector<1x16x128xf32>,
    } else {
    }
    %c0_i32_5 = arith.constant 0 : i32
    %7 = arith.cmpi sgt, %arg3, %c0_i32_5 : i32
    %8 = arith.extui %7 : i1 to i32
    %c0_i32_6 = arith.constant 0 : i32
    %9 = arith.cmpi ne, %8, %c0_i32_6 : i32
    scf.if %9 {
      %c0_7 = arith.constant 0 : index
      %c0_8 = arith.constant 0 : index
      %c0_9 = arith.constant 0 : index
      %10 = vector.load %arg7[%c0_7, %c0_8, %c0_9] : memref<1x16x128xf32, #tpu.memory_space<vmem>>, vector<1x16x128xf32>
      %11 = vector.shape_cast %10 : vector<1x16x128xf32> to vector<16x128xf32>
      %12 = arith.addf %11, %3 : vector<16x128xf32>
      %c0_10 = arith.constant 0 : index
      %c0_11 = arith.constant 0 : index
      %c0_12 = arith.constant 0 : index
      %13 = vector.load %arg7[%c0_10, %c0_11, %c0_12] : memref<1x16x128xf32, #tpu.memory_space<vmem>>, vector<1x16x128xf32>
      %14 = vector.shape_cast %13 : vector<1x16x128xf32> to vector<16x128xf32>
      %15 = vector.shape_cast %12 : vector<16x128xf32> to vector<1x16x128xf32>
      tpu.vector_store %arg7[%c0_10, %c0_11, %c0_12], %15 {strides = array<i32>} : memref<1x16x128xf32, #tpu.memory_space<vmem>>, vector<1x16x128xf32>,
    } else {
    }
    return
  }
  func.func @transform_0(%arg0: i32, %arg1: i32, %arg2: i32, %arg3: i32) -> (i32, i32, i32) {
    %c0_i32 = arith.constant 0 : i32
    return %arg0, %arg1, %arg3 : i32, i32, i32
  }
  func.func @transform_1(%arg0: i32, %arg1: i32, %arg2: i32, %arg3: i32) -> (i32, i32) {
    %c0_i32 = arith.constant 0 : i32
    return %arg3, %arg2 : i32, i32
  }
  func.func @transform_2(%arg0: i32, %arg1: i32, %arg2: i32, %arg3: i32) -> (i32, i32) {
    %c0_i32 = arith.constant 0 : i32
    return %arg1, %arg2 : i32, i32
  }
  func.func @transform_3(%arg0: i32, %arg1: i32, %arg2: i32, %arg3: i32) -> (i32, i32, i32) {
    %c0_i32 = arith.constant 0 : i32
    return %arg0, %arg1, %arg2 : i32, i32, i32
  }
}

</mosaic_0001>

<bundles_post_ra>
// kernel: embeddings3d_forward.1
= control target key start
LH: loop header
LB: loop body
LE: loop exit
PB: predicated region body
PF: predicated region fallthrough
CT: control target
= control target key end

     0   :  { %s806_s12 = smov 0   ;;  %s808_s13 = smov 0   ;;  %s900_s0 = inlined_call_operand.vmem [shape: bf16[2,16,256], index: 0, kind: input, shape index: {}]   ;;  %s901_s1 = inlined_call_operand.vmem [shape: bf16[256,128], index: 1, kind: input, shape index: {}]   ;;  %s902_s2 = inlined_call_operand.vmem [shape: f32[16,128], index: 2, kind: input, shape index: {}]   ;;  %s903_s3 = inlined_call_operand.vmem [shape: f32[2,16,128], index: 3, kind: output, shape index: {}]  }
   0x1   :  { %s810_s14 = smov 0  }
   0x2 LB: > { %s39_s15 = sadd.s32 1, %s780_s13  ;;  %p670_p0 = scmp.ge.s32.totalorder %s784_s14, 1  ;;  %s784_s14 = sphi %s810_s14, %s13_s14   ;;  %s780_s13 = sphi %s808_s13, %s905_s13   ;;  %s776_s12 = sphi %s806_s12, %s904_s12  }
   0x3   : > { %p41_p1 = scmp.ge.s32.totalorder %s39_s15, 2  ;;  %p214_p2 = scmp.lt.s32.totalorder %s784_s14, 3 }
   0x5   : > { %s907_s15 = smov (%p41_p1, %s39_s15), 0  ;;  %p215_p3 = pnand %p670_p0, %p214_p2 }
   0x6   : > { %v743_v0 = vld [vmem:[%s901_s1 + $0x40] sm:$0xff] (!%p215_p3)   ;;  %v745_v2 = vld [vmem:[%s901_s1 + $0x48] sm:$0xff] (!%p215_p3)   ;;  %p272_p4 = scmp.lt.s32.totalorder (!%p215_p3), %s776_s12, 1  ;;  %v747_v4 = vld [vmem:[%s901_s1 + $0x50] sm:$0xff] (!%p215_p3)  }
   0x7   : > { %218 = sbr.rel (%p215_p3) target bundleno = 259 (0x103), region = 32  ;;  %v744_v1 = vld [vmem:[%s901_s1] sm:$0xff] (!%p215_p3)   ;;  %697 = vmatprep.subr.bf16.mxu0 (!%p215_p3), %v743_v0  ;;  %v746_v3 = vld [vmem:[%s901_s1 + $0x8] sm:$0xff] (!%p215_p3)   ;;  %v748_v5 = vld [vmem:[%s901_s1 + $0x10] sm:$0xff] (!%p215_p3)  }
   0x8   : > { %698 = vmatpush3.bf16.msra.mxu0 (!%p215_p3), %v744_v1  ;;  %v749_v6 = vld [vmem:[%s901_s1 + $0x58] sm:$0xff] (!%p215_p3)   ;;  %v751_v8 = vld [vmem:[%s901_s1 + $0x60] sm:$0xff] (!%p215_p3)   ;;  %v753_v10 = vld [vmem:[%s901_s1 + $0x68] sm:$0xff] (!%p215_p3)  }
   0x9   : > { %699 = vmatprep.subr.bf16.mxu0 (!%p215_p3), %v745_v2  ;;  %v750_v7 = vld [vmem:[%s901_s1 + $0x18] sm:$0xff] (!%p215_p3)   ;;  %v752_v9 = vld [vmem:[%s901_s1 + $0x20] sm:$0xff] (!%p215_p3)   ;;  %v754_v12 = vld [vmem:[%s901_s1 + $0x28] sm:$0xff] (!%p215_p3)  }
   0xa   : > { %v755_v13 = vld [vmem:[%s901_s1 + $0x70] sm:$0xff] (!%p215_p3)   ;;  %v757_v15 = vld [vmem:[%s901_s1 + $0x78] sm:$0xff] (!%p215_p3)   ;;  %v503_v20 = vld [vmem:[%s902_s2] sm:$0xff] (!%p215_p3) }
   0xb   : > { %v756_v14 = vld [vmem:[%s901_s1 + $0x30] sm:$0xff] (!%p215_p3)   ;;  %v758_v16 = vld [vmem:[%s901_s1 + $0x38] sm:$0xff] (!%p215_p3)   ;;  %v504_v24 = vld [vmem:[%s902_s2 + $0x8] sm:$0xff] (!%p215_p3) }
   0xc   : > { %700 = vmatpush3.bf16.msra.mxu0 (!%p215_p3), %v746_v3 }
   0xd   : > { %701 = vmatprep.subr.bf16.mxu0 (!%p215_p3), %v747_v4 }
   0xe   : > { %s909_s12 = smov (!%p272_p4, %s776_s12), 1 }
   0xf   : > { %s695_s5 = sshll.u32 %s909_s12, 4 }
  0x10   : > { %702 = vmatpush3.bf16.msra.mxu0 %v748_v5  ;;  %s283_s10 = scalar_lea.vmem %s900_s0, %s695_s5  ;;  %s315_s7 = scalar_lea.vmem %s903_s3, %s695_s5 }
  0x11   : > { %703 = vmatprep.subr.bf16.mxu0 %v749_v6  ;;  %v761_v11 = vld [vmem:[%s283_s10 + $0x4] ss:$8 sps:$4 sm:$0xff]   ;;  %v759_v17 = vld [vmem:[%s283_s10] ss:$8 sps:$4 sm:$0xff]  }
  0x12   : > { %490 = vmatprep.mubr.bf16.mxu0 %v761_v11 }
  0x14   : > { %704 = vmatpush3.bf16.msra.mxu0 %v750_v7 }
  0x15   : > { %705 = vmatprep.subr.bf16.mxu0 %v751_v8 }
  0x18   : > { %706 = vmatpush3.bf16.msra.mxu0 %v752_v9 }
  0x19   : > { %707 = vmatprep.subr.bf16.mxu0 %v753_v10 }
  0x1c   : > { %708 = vmatpush3.bf16.msra.mxu0 %v754_v12 }
  0x1d   : > { %709 = vmatprep.subr.bf16.mxu0 %v755_v13 }
  0x20   : > { %710 = vmatpush3.bf16.msra.mxu0 %v756_v14 }
  0x21   : > { %711 = vmatprep.subr.bf16.mxu0 %v757_v15 }
  0x24   : > { %712 = vmatpush3.bf16.msra.mxu0 %v758_v16 }
  0x27   : > { %491 = vmatmul.mubr.bf16.vlgmr.msra.gmra.mrb[0].mxu0 %v759_v17 }
  0xfa   : > { %v713_v18 = vpop.f32.mrb[0].mxu0 }
  0xfb   : > { %v714_v19 = vpop.f32.mrb[1].mxu0 }
  0xfc   : > { %v715_v21 = vadd.f32 %v714_v19, %v713_v18  ;;  %v716_v22 = vpop.f32.mrb[2].mxu0 }
  0xfd   : > { %v717_v23 = vpop.f32.mrb[3].mxu0 }
  0xfe   : > { %v505_v25 = vadd.f32 %v715_v21, %v503_v20  ;;  %v718_v26 = vadd.f32 %v717_v23, %v716_v22 }
 0x100   : > { %507 = vst [vmem:[%s315_s7] sm:$0xff] %v505_v25  ;;  %v506_v27 = vadd.f32 %v718_v26, %v504_v24 }
 0x102   : > { %508 = vst [vmem:[%s315_s7 + $0x8] sm:$0xff] %v506_v27 }
 0x103 PF: > { %s13_s14 = sadd.s32 1, %s784_s14   ;;  %s904_s12 = smov %s780_s13 }
 0x104   : > { %p10_p5 = scmp.ge.s32.totalorder %s13_s14, 4   ;;  %s905_s13 = smov %s907_s15 }
 0x106   :  { %12 = sbr.rel (!%p10_p5) target bundleno = 2 (0x2), region = 76 }

</bundles_post_ra>
